<compile_context>
chip_gen: v7x
topology: tpu7x:2x2x1
jax: 0.10.0
libtpu: 0.0.40
codegen_flags: <defaults>
</compile_context>

<pallas_src>
import math

import jax
import jax.numpy as jnp
from jax.experimental import pallas as pl
from jax.experimental.pallas import tpu as pltpu

_LANE = 128      # lane width (last-dim alignment)
_SUBLANE = 8     # sublane width (second-to-last-dim alignment, f32)


def _round_up(x, m):
    return ((x + m - 1) // m) * m


def _vmem_capacity_bytes():
    """Per-core VMEM capacity; conservative fallback if the query is unavailable."""
    try:
        return int(pltpu.get_tpu_info().vmem_capacity_bytes)
    except Exception:
        return 64 << 20   # v7x per-TensorCore VMEM (smallest current generation)


def _linear_relu_kernel(x_ref, w_ref, b_ref, o_ref):
    # x_ref: (tm, Ep)  w_ref: (Ep, tn)  b_ref: (1, tn) f32  o_ref: (tm, tn)
    acc = jnp.dot(x_ref[...], w_ref[...], preferred_element_type=jnp.float32)
    acc = acc + b_ref[...]                       # f32 epilogue, broadcast over rows
    o_ref[...] = jnp.maximum(acc, 0.0).astype(o_ref.dtype)


def prepare_local_decoder_params(weight, bias, *, compute_dtype=jnp.bfloat16):
    """One-time parameter prep (do NOT call per forward).

    weight: (N, E) PyTorch layout -> pre-transposed, E/N zero-padded to 128,
            stored in `compute_dtype` (bf16 by default: MXU-native, half HBM).
    bias:   (N,) -> (1, N_pad), kept float32 for the f32 epilogue (VPU path).
    Returns (w_pad, b_pad, n_out).
    """
    n_out, embed = weight.shape
    e_pad = _round_up(embed, _LANE)
    n_pad = _round_up(n_out, _LANE)
    w_pad = (jnp.zeros((e_pad, n_pad), compute_dtype)
             .at[:embed, :n_out].set(weight.T.astype(compute_dtype)))
    b_pad = (jnp.zeros((1, n_pad), jnp.float32)
             .at[0, :n_out].set(bias.astype(jnp.float32)))
    return w_pad, b_pad, n_out


def local_decoder_forward(x, w_pad, b_pad, n_out, *, out_dtype=None):
    """x: (..., E); w_pad: (E_pad, N_pad) pre-transposed/padded; b_pad: (1, N_pad) f32."""
    *lead, embed = x.shape
    e_pad, n_pad = w_pad.shape
    compute_dtype = w_pad.dtype
    out_dtype = out_dtype or x.dtype

    m = int(math.prod(lead))
    x2d = x.reshape(m, embed)

    # Cast to the MXU compute dtype; zero-pad the contraction dim only when
    # required (fused with the cast -> no extra HBM pass; M is never padded).
    if e_pad != embed:
        x2d = (jnp.zeros((m, e_pad), compute_dtype)
               .at[:, :embed].set(x2d.astype(compute_dtype)))
    elif x2d.dtype != compute_dtype:
        x2d = x2d.astype(compute_dtype)

    x_b = jnp.dtype(compute_dtype).itemsize
    w_b = jnp.dtype(w_pad.dtype).itemsize
    o_b = jnp.dtype(out_dtype).itemsize

    cap = int(0.85 * _vmem_capacity_bytes())       # leave compiler headroom

    # ---- Row (M) tile -------------------------------------------------------
    pack = _SUBLANE * max(1, 4 // x_b)             # full sublane pack: 8 f32 / 16 bf16
    tm_max = 1024 if cap >= (80 << 20) else 512    # bigger tiles on 128-MiB parts
    tm = min(tm_max, _round_up(m, pack))
    if m >= 512:
        # Keep >= 2 row tiles so the "parallel" M axis feeds both v7x cores.
        tm = min(tm, _round_up(pl.cdiv(m, 2), 256))
    tm = max(pack, _round_up(tm, pack))
    grid_m = pl.cdiv(m, tm)

    # ---- Column (N) tile ----------------------------------------------------
    # Keep the whole weight resident when its double-buffered footprint is
    # comfortably inside VMEM; otherwise stream lane-aligned column tiles.
    weight_budget = max(8 << 20, int(0.4 * cap))
    if 2 * e_pad * n_pad * w_b <= weight_budget:
        tn = n_pad
    else:
        tn = max(_LANE, (weight_budget // (2 * e_pad * w_b)) // _LANE * _LANE)
        tn = min(tn, n_pad)
    grid_n = pl.cdiv(n_pad, tn)

    # Pallas double-buffers every operand by default — budget for that.
    vmem_need = (2 * tm * e_pad * x_b          # x row tile
                 + 2 * e_pad * tn * w_b        # weight column tile
                 + 2 * 1 * tn * 4              # f32 bias tile
                 + 2 * tm * tn * o_b)          # output tile
    vmem_limit = int(min(cap, max(vmem_need + (16 << 20), 32 << 20)))

    cost = pl.CostEstimate(
        flops=2 * m * e_pad * n_pad,
        transcendentals=0,
        bytes_accessed=int(grid_n * m * e_pad * x_b + e_pad * n_pad * w_b
                           + n_pad * 4 + m * n_pad * o_b),
    )

    out2d = pl.pallas_call(
        _linear_relu_kernel,
        out_shape=jax.ShapeDtypeStruct((m, n_pad), out_dtype),
        grid_spec=pltpu.PrefetchScalarGridSpec(
            num_scalar_prefetch=0,
            # N outermost so each weight/bias column tile stays resident in
            # VMEM across the whole inner M sweep (fetched once per j).
            grid=(grid_n, grid_m),
            in_specs=[
                pl.BlockSpec((tm, e_pad), lambda j, i: (i, 0)),   # x row tile
                pl.BlockSpec((e_pad, tn), lambda j, i: (0, j)),   # weight cols
                pl.BlockSpec((1, tn),     lambda j, i: (0, j)),   # bias cols (f32)
            ],
            out_specs=pl.BlockSpec((tm, tn), lambda j, i: (i, j)),
        ),
        compiler_params=pltpu.CompilerParams(
            dimension_semantics=("parallel", "parallel"),
            vmem_limit_bytes=vmem_limit,
        ),
        cost_estimate=cost,
    )(x2d, w_pad, b_pad)

    # Strip the lane padding on N and restore leading dims (M was never padded).
    out = out2d[:, :n_out]
    return out.reshape(*lead, n_out)


if __name__ == "__main__":
    embed_size = 32
    input_size = 64
    batch, seq = 2, 8

    key = jax.random.PRNGKey(0)
    kx, kw, kb = jax.random.split(key, 3)

    # Deterministic parameter init (mimics nn.Linear's uniform fan-in init).
    bound = 1.0 / (embed_size ** 0.5)
    weight = jax.random.uniform(kw, (input_size, embed_size), jnp.float32,
                                minval=-bound, maxval=bound)
    bias = jax.random.uniform(kb, (input_size,), jnp.float32,
                              minval=-bound, maxval=bound)
    x = jax.random.normal(kx, (batch, seq, embed_size), jnp.float32)

    # One-time parameter prep (transpose + pad + bf16 cast), outside the forward.
    w_pad, b_pad, n_out = prepare_local_decoder_params(weight, bias)

    out = local_decoder_forward(x, w_pad, b_pad, n_out)
    out = jax.block_until_ready(out)
    assert out.shape == (batch, seq, input_size)
    assert out.dtype == x.dtype

    # Reference with the same bf16 operand quantization + f32 accumulation.
    xq = x.reshape(-1, embed_size).astype(jnp.bfloat16).astype(jnp.float32)
    wq = weight.astype(jnp.bfloat16).astype(jnp.float32)
    ref = jnp.maximum(
        jnp.dot(xq, wq.T, precision=jax.lax.Precision.HIGHEST) + bias, 0.0
    ).reshape(batch, seq, input_size)
    assert jnp.allclose(out, ref, atol=1e-4, rtol=1e-4), \
        float(jnp.max(jnp.abs(out - ref)))

    # Loose sanity check against the pure-f32 reference (bf16 quantization noise).
    ref_f32 = jnp.maximum(x @ weight.T + bias, 0.0)
    assert jnp.allclose(out, ref_f32, atol=1e-1, rtol=1e-1)

    print("KERNEL_OK")
</pallas_src>

<mosaic_0001>
module attributes {stable_mosaic.version = 11 : i64} {
  func.func @_linear_relu_kernel(%arg0: i32, %arg1: i32, %arg2: memref<16x128xbf16, #tpu.memory_space<vmem>>, %arg3: memref<128x128xbf16, #tpu.memory_space<vmem>>, %arg4: memref<1x128xf32, #tpu.memory_space<vmem>>, %arg5: memref<16x128xf32, #tpu.memory_space<vmem>>) attributes {dimension_semantics = [#tpu.dimension_semantics<parallel>, #tpu.dimension_semantics<parallel>], iteration_bounds = array<i64: 1, 1>, scalar_prefetch = 0 : i64, scratch_operands = 0 : i64, tpu.core_type = #tpu.core_type<tc>, window_params = [{transform_indices = @transform_0, window_bounds = array<i64: 16, 128>}, {transform_indices = @transform_1, window_bounds = array<i64: 128, 128>}, {transform_indices = @transform_2, window_bounds = array<i64: 1, 128>}, {transform_indices = @transform_3, window_bounds = array<i64: 16, 128>}]} {
    %c0 = arith.constant 0 : index
    %c0_0 = arith.constant 0 : index
    %0 = vector.load %arg2[%c0, %c0_0] : memref<16x128xbf16, #tpu.memory_space<vmem>>, vector<16x128xbf16>
    %c0_1 = arith.constant 0 : index
    %c0_2 = arith.constant 0 : index
    %1 = vector.load %arg3[%c0_1, %c0_2] : memref<128x128xbf16, #tpu.memory_space<vmem>>, vector<128x128xbf16>
    %cst = arith.constant dense<0.000000e+00> : vector<16x128xf32>
    %2 = tpu.matmul %0, %1, %cst {dimension_numbers = #tpu.dot_dimension_numbers<[1], [0], [0], [1], [0, 0, 1, 1], [], []>} : vector<16x128xbf16>, vector<128x128xbf16>, vector<16x128xf32> -> vector<16x128xf32>
    %c0_3 = arith.constant 0 : index
    %c0_4 = arith.constant 0 : index
    %3 = vector.load %arg4[%c0_3, %c0_4] : memref<1x128xf32, #tpu.memory_space<vmem>>, vector<1x128xf32>
    %4 = vector.broadcast %3 : vector<1x128xf32> to vector<16x128xf32>
    %5 = arith.addf %2, %4 : vector<16x128xf32>
    %cst_5 = arith.constant 0.000000e+00 : f32
    %6 = vector.broadcast %cst_5 : f32 to vector<16x128xf32>
    %7 = arith.maximumf %5, %6 : vector<16x128xf32>
    %c0_6 = arith.constant 0 : index
    %c0_7 = arith.constant 0 : index
    %8 = vector.load %arg5[%c0_6, %c0_7] : memref<16x128xf32, #tpu.memory_space<vmem>>, vector<16x128xf32>
    tpu.vector_store %arg5[%c0_6, %c0_7], %7 {strides = array<i32>} : memref<16x128xf32, #tpu.memory_space<vmem>>, vector<16x128xf32>,
    return
  }
  func.func @transform_0(%arg0: i32, %arg1: i32) -> (i32, i32) {
    %c0_i32 = arith.constant 0 : i32
    %c0_i32_0 = arith.constant 0 : i32
    return %arg1, %c0_i32 : i32, i32
  }
  func.func @transform_1(%arg0: i32, %arg1: i32) -> (i32, i32) {
    %c0_i32 = arith.constant 0 : i32
    %c0_i32_0 = arith.constant 0 : i32
    return %c0_i32, %arg0 : i32, i32
  }
  func.func @transform_2(%arg0: i32, %arg1: i32) -> (i32, i32) {
    %c0_i32 = arith.constant 0 : i32
    %c0_i32_0 = arith.constant 0 : i32
    return %c0_i32, %arg0 : i32, i32
  }
  func.func @transform_3(%arg0: i32, %arg1: i32) -> (i32, i32) {
    %c0_i32 = arith.constant 0 : i32
    return %arg1, %arg0 : i32, i32
  }
}

</mosaic_0001>

<bundles_post_ra>
// kernel: tpu_custom_call.1
= control target key start
LH: loop header
LB: loop body
LE: loop exit
PB: predicated region body
PF: predicated region fallthrough
CT: control target
= control target key end

     0   :  { %8 = vsyncpa [#allocation3], 0  ;;  %s383_s0 = inlined_call_operand.hbm [shape: bf16[16,128], index: 0, kind: input, shape index: {}]   ;;  %s384_s1 = inlined_call_operand.hbm [shape: bf16[128,128], index: 1, kind: input, shape index: {}]   ;;  %s385_s2 = inlined_call_operand.vmem [shape: f32[1,128], index: 2, kind: input, shape index: {}]   ;;  %s386_s3 = inlined_call_operand.hbm [shape: f32[16,128], index: 3, kind: output, shape index: {}]  }
   0x1   :  { %9 = vsyncpa [#allocation6], 0 }
   0x2   :  { %10 = vsyncpa [#allocation4], 0  ;;  %s315_s12 = smov [#allocation2]   ;;  %s243_s16 = scalar_lea.hbm %s383_s0, 128 }
   0x3   :  { %s16_s13 = sshll.u32 %s315_s12, 4  ;;  %p244_p0 = scmp.ne.s32.totalorder %s383_s0, %s243_s16  ;;  %s17_s13 = int_to_ptr.vmem [resolvable:$true] %s16_s13 }
   0x4   :  { %p247_p1 = scmp.lt.u32.totalorder %s243_s16, %s383_s0 }
   0x6   :  { %p249_p2 = pnand %p247_p1, %p244_p0 }
   0x8   :  { %252 = shalt.err (!%p249_p2)
}
   0x9   :  { %s253_s21 = scalar_lea.vmem %s17_s13, 128  ;;  %p258_p4 = scmp.lt.s32.totalorder %s17_s13, %s17_s13 }
   0xa   :  { %p254_p3 = scmp.ne.s32.totalorder %s17_s13, %s253_s21  ;;  %p259_p5 = scmp.lt.s32.totalorder %s253_s21, %s253_s21 }
   0xc   :  { %p260_p6 = por %p259_p5, %p258_p4 }
   0xe   :  { %p261_p7 = pnand %p260_p6, %p254_p3 }
  0x10   :  { %264 = shalt.err (!%p261_p7)
}
  0x11   :  { %s316_s22 = smov 64   ;;  %s317_s23 = smov 4  }
  0x12   :  { %22 = dma.hbm_to_vmem [thread:$0]  %s383_s0, 128, %s17_s13, [#allocation3], %s316_s22, %s316_s22, %s317_s23  }
  0x13   :  { %s318_s26 = smov [#allocation5]   ;;  %s265_s30 = scalar_lea.hbm %s384_s1, 1024 }
  0x14   :  { %s28_s27 = sshll.u32 %s318_s26, 4  ;;  %p266_p8 = scmp.ne.s32.totalorder %s384_s1, %s265_s30  ;;  %s29_s27 = int_to_ptr.vmem [resolvable:$true] %s28_s27 }
  0x15   :  { %p269_p9 = scmp.lt.u32.totalorder %s265_s30, %s384_s1 }
  0x17   :  { %p271_p10 = pnand %p269_p9, %p266_p8 }
  0x19   :  { %274 = shalt.err (!%p271_p10)
}
  0x1a   :  { %s275_s8 = scalar_lea.vmem %s29_s27, 1024  ;;  %p280_p12 = scmp.lt.s32.totalorder %s29_s27, %s29_s27 }
  0x1b   :  { %p276_p11 = scmp.ne.s32.totalorder %s29_s27, %s275_s8  ;;  %p281_p13 = scmp.lt.s32.totalorder %s275_s8, %s275_s8 }
  0x1d   :  { %p282_p0 = por %p281_p13, %p280_p12 }
  0x1f   :  { %p283_p1 = pnand %p282_p0, %p276_p11 }
  0x21   :  { %286 = shalt.err (!%p283_p1)
}
  0x22   :  { %34 = dma.hbm_to_vmem [thread:$0]  %s384_s1, 1024, %s29_s27, [#allocation6], %s316_s22, %s316_s22, %s317_s23  }
  0x23   :  { %309 = dma.done.wait [#allocation3], 128  }
  0x24   :  { %310 = vsyncadd [#allocation3], 4294967168 }
  0x25   :  { %311 = dma.done.wait [#allocation6], 1024  }
  0x26   :  { %312 = vsyncadd [#allocation6], 4294966272  ;;  %v319_v0 = vmov 0.0   ;;  %vm320_vm0 = vmmov 0   ;;  %v234_v1 = vld [vmem:[#allocation5] sm:$0xff]   ;;  %v235_v2 = vld [vmem:[#allocation5 + $0x8] sm:$0xff]  }
  0x27   :  { %205 = vmatprep.subr.bf16.mxu0 %v319_v0  ;;  %221 = vmatprep.mubr.msk.bf16.mxu0 %vm320_vm0, %v319_v0  ;;  %v236_v3 = vld [vmem:[#allocation5 + $0x10] sm:$0xff]   ;;  %v237_v4 = vld [vmem:[#allocation5 + $0x18] sm:$0xff]   ;;  %v238_v5 = vld [vmem:[#allocation5 + $0x20] sm:$0xff]   ;;  %s321_s11 = smov [#allocation7]  }
  0x28   :  { %206 = vmatpush3.bf16.msra.mxu0 %v234_v1  ;;  %v239_v6 = vld [vmem:[#allocation5 + $0x28] sm:$0xff]   ;;  %v240_v7 = vld [vmem:[#allocation5 + $0x30] sm:$0xff]   ;;  %v241_v8 = vld [vmem:[#allocation5 + $0x38] sm:$0xff]   ;;  %s173_s12 = sshll.u32 %s321_s11, 4  ;;  %s174_s12 = int_to_ptr.vmem [resolvable:$true] %s173_s12 }
  0x29   :  { %207 = vmatprep.subr.bf16.mxu0 %v319_v0  ;;  %v242_v9 = vld [vmem:[#allocation2] sm:$0xff]   ;;  %s287_s13 = scalar_lea.vmem %s174_s12, 256  ;;  %p292_p3 = scmp.lt.s32.totalorder %s174_s12, %s174_s12 }
  0x2a   :  { %v186_v10 = vld [vmem:[%s385_s2] ss:$0 sm:$0xff]  ;;  %p288_p2 = scmp.ne.s32.totalorder %s174_s12, %s287_s13  ;;  %p293_p4 = scmp.lt.s32.totalorder %s287_s13, %s287_s13 }
  0x2c   :  { %208 = vmatpush3.bf16.msra.mxu0 %v235_v2  ;;  %p294_p5 = por %p293_p4, %p292_p3 }
  0x2d   :  { %209 = vmatprep.subr.bf16.mxu0 %v319_v0 }
  0x2e   :  { %p295_p6 = pnand %p294_p5, %p288_p2 }
  0x30   :  { %210 = vmatpush3.bf16.msra.mxu0 %v236_v3 }
  0x31   :  { %211 = vmatprep.subr.bf16.mxu0 %v319_v0 }
  0x34   :  { %212 = vmatpush3.bf16.msra.mxu0 %v237_v4 }
  0x35   :  { %213 = vmatprep.subr.bf16.mxu0 %v319_v0 }
  0x38   :  { %214 = vmatpush3.bf16.msra.mxu0 %v238_v5 }
  0x39   :  { %215 = vmatprep.subr.bf16.mxu0 %v319_v0 }
  0x3c   :  { %216 = vmatpush3.bf16.msra.mxu0 %v239_v6 }
  0x3d   :  { %217 = vmatprep.subr.bf16.mxu0 %v319_v0 }
  0x40   :  { %218 = vmatpush3.bf16.msra.mxu0 %v240_v7 }
  0x41   :  { %219 = vmatprep.subr.bf16.mxu0 %v319_v0 }
  0x44   :  { %220 = vmatpush3.bf16.msra.mxu0 %v241_v8 }
  0x47   :  { %222 = vmatmul.mubr.bf16.vlgmr.msra.gmra.mrb[0].mxu0 %v242_v9 }
 0x11a   :  { %v157_v11 = vpop.f32.mrb[0].mxu0 }
 0x11b   :  { %v158_v12 = vadd.f32 %v186_v10, %v157_v11  ;;  %v223_v13 = vpop.f32.mrb[1].mxu0 }
 0x11c   :  { %v160_v14 = vpop.f32.mrb[2].mxu0 }
 0x11d   :  { %v164_v15 = vmax.f32 %v158_v12, 0.0  ;;  %v161_v16 = vadd.f32 %v186_v10, %v160_v14  ;;  %v224_v17 = vpop.f32.mrb[3].mxu0 }
 0x11f   :  { %166 = vst [vmem:[#allocation7] sm:$0xff] %v164_v15  ;;  %v165_v18 = vmax.f32 %v161_v16, 0.0 }
 0x121   :  { %167 = vst [vmem:[#allocation7 + $0x8] sm:$0xff] %v165_v18 }
 0x122   :  { %298 = shalt.err (!%p295_p6)
}
 0x123   :  { %s299_s15 = scalar_lea.hbm %s386_s3, 256 }
 0x124   :  { %p300_p7 = scmp.ne.s32.totalorder %s386_s3, %s299_s15  ;;  %p303_p8 = scmp.lt.u32.totalorder %s299_s15, %s386_s3 }
 0x126   :  { %p305_p9 = pnand %p303_p8, %p300_p7 }
 0x128   :  { %308 = shalt.err (!%p305_p9)
}
 0x129   :  { %s322_s20 = smov 128   ;;  %s323_s21 = smov 8  }
 0x12a   :  { %179 = dma.vmem_to_hbm [thread:$0]  %s174_s12, 256, %s386_s3, [#allocation4], %s322_s20, %s322_s20, %s323_s21  }
 0x12b   :  { %313 = dma.done.wait [#allocation4], 256  }
 0x12c   :  { %314 = vsyncadd [#allocation4], 4294967040 }
 0x12d   :  { %183 = vsyncpa [#allocation3], 1 }
 0x12e   :  { %184 = vsyncpa [#allocation6], 1 }
 0x12f   :  { %185 = vsyncpa [#allocation4], 1 }

</bundles_post_ra>
